<compile_context>
chip_gen: v5e
topology: v5e:2x2
jax: 0.10.0
libtpu: 0.0.40
codegen_flags: <defaults>
</compile_context>

<pallas_src>
import jax
import jax.numpy as jnp
from jax import lax
from jax.experimental import pallas as pl
from jax.experimental.pallas import tpu as pltpu

LN_EPS = 1e-5
_INV_SQRT2 = 0.7071067811865476


def ffn_kernel(x_ref, gamma_ref, beta_ref, w1_ref, b1_ref, w2_ref, b2_ref,
               o_ref, xn_ref, acc_ref):
    h_idx = pl.program_id(1)

    # ---- First H step for this row tile: LayerNorm once, zero the accumulator ----
    @pl.when(h_idx == 0)
    def _():
        x = x_ref[...].astype(jnp.float32)                      # (tm, D)
        mean = jnp.mean(x, axis=-1, keepdims=True)
        xc = x - mean
        var = jnp.mean(xc * xc, axis=-1, keepdims=True)
        inv = lax.rsqrt(var + LN_EPS)
        xn = xc * inv * gamma_ref[...].astype(jnp.float32) + beta_ref[...].astype(jnp.float32)
        xn_ref[...] = xn.astype(xn_ref.dtype)                   # stored in weight dtype for MXU
        acc_ref[...] = jnp.zeros_like(acc_ref)

    # ---- Linear(dim -> th block): MXU in weight dtype, f32 accumulation ----
    h = jnp.dot(xn_ref[...], w1_ref[...], preferred_element_type=jnp.float32)  # (tm, th)
    h = h + b1_ref[...].astype(jnp.float32)                     # bias1: once per H-block column range

    # ---- GELU (exact, erf-based; matches torch.nn.GELU default), f32 ----
    h = 0.5 * h * (1.0 + lax.erf(h * _INV_SQRT2))

    # ---- Linear(th block -> dim): accumulate partial products in f32 scratch ----
    acc_ref[...] += jnp.dot(h.astype(w2_ref.dtype), w2_ref[...],
                            preferred_element_type=jnp.float32)

    # ---- Last H step: bias2, dropout(p=0) identity, residual add, store ----
    @pl.when(h_idx == pl.num_programs(1) - 1)
    def _():
        y = acc_ref[...] + b2_ref[...].astype(jnp.float32)
        o_ref[...] = (y + x_ref[...].astype(jnp.float32)).astype(o_ref.dtype)


def _round_up(a, b):
    return ((a + b - 1) // b) * b


def _tpu_vmem_capacity_bytes():
    try:
        return int(pltpu.get_tpu_info().vmem_capacity_bytes)
    except Exception:
        return 64 << 20   # conservative fallback (v7x per-core size); safe everywhere


def feed_forward(x, gamma, beta, w1, b1, w2, b2, *,
                 tm=None, th=512, param_dtype=jnp.bfloat16):
    """x: [B, N, D]; w1: [D, H]; w2: [H, D]. Returns [B, N, D]."""
    B, N, D = x.shape
    Din, H = w1.shape
    assert Din == D and w2.shape == (H, D)
    M = B * N

    # ---- generation-aware VMEM budget & row-tile size ----
    cap = _tpu_vmem_capacity_bytes()
    budget = max(32 << 20, int(cap * 0.82))       # leave headroom for Mosaic scratch / 2nd buffers
    if tm is None:
        tm = 256 if cap <= (64 << 20) else 512    # v7x: 256; v5e/v6e (128 MiB): 512
    tm_eff = max(8, (min(int(tm), _round_up(M, 8)) // 8) * 8)

    # ---- hidden-block size: full H, or a multiple of 128 (lane constraint) ----
    th = int(th)
    th_eff = H if H <= th else max(128, (th // 128) * 128)

    x_it = jnp.dtype(x.dtype).itemsize
    w_it = jnp.dtype(param_dtype).itemsize

    def vmem_needed(tm_, th_):
        return (2 * tm_ * D * x_it                # x tiles   (double-buffered)
                + 2 * tm_ * D * x_it              # out tiles (double-buffered)
                + 2 * D * th_ * w_it              # W1 block  (double-buffered)
                + 2 * th_ * D * w_it              # W2 block  (double-buffered)
                + 2 * th_ * 4 + 6 * D * 4         # b1 block + gamma/beta/b2
                + tm_ * D * w_it                  # xn scratch
                + tm_ * D * 4                     # f32 accumulator scratch
                + 3 * tm_ * th_ * 4               # live f32 GELU intermediates
                + (4 << 20))                      # Mosaic internal scratch margin

    # Shrink th then tm until the working set fits the budget.
    while vmem_needed(tm_eff, th_eff) > budget and th_eff > 128:
        th_eff = max(128, ((th_eff // 2) // 128) * 128)
    while vmem_needed(tm_eff, th_eff) > budget and tm_eff > 8:
        tm_eff = max(8, ((tm_eff // 2) // 8) * 8)

    n_m = pl.cdiv(M, tm_eff)
    M_pad = n_m * tm_eff
    H_pad = H if th_eff >= H else _round_up(H, th_eff)
    n_h = pl.cdiv(H_pad, th_eff)

    # ---- prep / pad operands (padded rows are sliced off; padded H columns are
    #      zero-weight so they contribute exactly zero to the accumulator) ----
    x2 = x.reshape(M, D)
    if M_pad != M:
        x2 = jnp.pad(x2, ((0, M_pad - M), (0, 0)))

    gamma2 = gamma.reshape(1, D).astype(jnp.float32)
    beta2 = beta.reshape(1, D).astype(jnp.float32)
    b2_2 = b2.reshape(1, D).astype(jnp.float32)
    w1p = w1.astype(param_dtype)
    w2p = w2.astype(param_dtype)
    b1p = b1.reshape(1, H).astype(jnp.float32)
    if H_pad != H:
        w1p = jnp.pad(w1p, ((0, 0), (0, H_pad - H)))
        w2p = jnp.pad(w2p, ((0, H_pad - H), (0, 0)))
        b1p = jnp.pad(b1p, ((0, 0), (0, H_pad - H)))

    vmem_limit = int(min(max(vmem_needed(tm_eff, th_eff), 16 << 20), budget))

    out_it = jnp.dtype(x.dtype).itemsize
    cost = pl.CostEstimate(
        flops=int(4 * M_pad * D * H_pad),                         # two matmuls
        transcendentals=int(M_pad * H_pad),                       # erf
        bytes_accessed=int(M_pad * D * (x_it + out_it)            # x read + out write
                           + n_m * 2 * D * H_pad * w_it           # W1/W2 re-read per row tile
                           + H_pad * 4 + 3 * D * 4),
    )

    out = pl.pallas_call(
        ffn_kernel,
        out_shape=jax.ShapeDtypeStruct((M_pad, D), x.dtype),
        grid_spec=pltpu.PrefetchScalarGridSpec(
            num_scalar_prefetch=0,
            grid=(n_m, n_h),                                       # H (reduction) innermost
            in_specs=[
                pl.BlockSpec((tm_eff, D), lambda i, h: (i, 0)),    # x tile (resident across h)
                pl.BlockSpec((1, D), lambda i, h: (0, 0)),         # gamma
                pl.BlockSpec((1, D), lambda i, h: (0, 0)),         # beta
                pl.BlockSpec((D, th_eff), lambda i, h: (0, h)),    # W1 block (streamed over h)
                pl.BlockSpec((1, th_eff), lambda i, h: (0, h)),    # b1 block
                pl.BlockSpec((th_eff, D), lambda i, h: (h, 0)),    # W2 block (streamed over h)
                pl.BlockSpec((1, D), lambda i, h: (0, 0)),         # b2
            ],
            out_specs=pl.BlockSpec((tm_eff, D), lambda i, h: (i, 0)),
            scratch_shapes=[
                pltpu.VMEM((tm_eff, D), w1p.dtype),                # LN output (weight dtype)
                pltpu.VMEM((tm_eff, D), jnp.float32),              # f32 accumulator
            ],
        ),
        compiler_params=pltpu.CompilerParams(
            dimension_semantics=("parallel", "arbitrary"),
            vmem_limit_bytes=vmem_limit,
        ),
        cost_estimate=cost,
    )(x2, gamma2, beta2, w1p, b1p, w2p, b2_2)

    if M_pad != M:
        out = out[:M]
    return out.reshape(B, N, D)


def reference(x, gamma, beta, w1, b1, w2, b2):
    xf = x.astype(jnp.float32)
    mean = jnp.mean(xf, axis=-1, keepdims=True)
    var = jnp.mean((xf - mean) ** 2, axis=-1, keepdims=True)
    xn = (xf - mean) * lax.rsqrt(var + LN_EPS) * gamma + beta
    h = xn @ w1.astype(jnp.float32) + b1
    h = 0.5 * h * (1.0 + lax.erf(h * _INV_SQRT2))
    y = h @ w2.astype(jnp.float32) + b2
    return (y + xf).astype(x.dtype)


if __name__ == "__main__":
    # Small but representative shapes: lane-dense D (=128) and H > one 128-block so the
    # (row-tile, H-block) grid and the f32 accumulator path are genuinely exercised.
    B, N, D, H = 2, 8, 128, 256

    key = jax.random.PRNGKey(0)
    kx, kw1, kb1, kw2, kb2 = jax.random.split(key, 5)

    x = jax.random.normal(kx, (B, N, D), dtype=jnp.float32)
    gamma = jnp.ones((D,), dtype=jnp.float32)
    beta = jnp.zeros((D,), dtype=jnp.float32)
    w1 = jax.random.normal(kw1, (D, H), dtype=jnp.float32) * 0.02
    b1 = jax.random.normal(kb1, (H,), dtype=jnp.float32) * 0.02
    w2 = jax.random.normal(kw2, (H, D), dtype=jnp.float32) * 0.02
    b2 = jax.random.normal(kb2, (D,), dtype=jnp.float32) * 0.02

    # 1) f32-parameter path, small tiles -> grid (2 row tiles, 2 H blocks); tight tolerance.
    out32 = feed_forward(x, gamma, beta, w1, b1, w2, b2,
                         tm=8, th=128, param_dtype=jnp.float32)
    out32 = jax.block_until_ready(out32)
    ref32 = reference(x, gamma, beta, w1, b1, w2, b2)
    assert out32.shape == (B, N, D)
    assert jnp.allclose(out32, ref32, atol=1e-4, rtol=1e-4), \
        float(jnp.max(jnp.abs(out32 - ref32)))

    # 2) bf16-parameter path (production default); compare against a bf16-weight reference.
    outbf = feed_forward(x, gamma, beta, w1, b1, w2, b2, param_dtype=jnp.bfloat16)
    outbf = jax.block_until_ready(outbf)
    refbf = reference(x, gamma, beta,
                      w1.astype(jnp.bfloat16).astype(jnp.float32), b1,
                      w2.astype(jnp.bfloat16).astype(jnp.float32), b2)
    assert jnp.allclose(outbf, refbf, atol=2e-2, rtol=2e-2), \
        float(jnp.max(jnp.abs(outbf - refbf)))

    print("KERNEL_OK")
</pallas_src>

<mosaic_0001>
module attributes {stable_mosaic.version = 11 : i64} {
  func.func @ffn_kernel(%arg0: i32, %arg1: i32, %arg2: memref<8x128xf32, #tpu.memory_space<vmem>>, %arg3: memref<1x128xf32, #tpu.memory_space<vmem>>, %arg4: memref<1x128xf32, #tpu.memory_space<vmem>>, %arg5: memref<128x128xf32, #tpu.memory_space<vmem>>, %arg6: memref<1x128xf32, #tpu.memory_space<vmem>>, %arg7: memref<128x128xf32, #tpu.memory_space<vmem>>, %arg8: memref<1x128xf32, #tpu.memory_space<vmem>>, %arg9: memref<8x128xf32, #tpu.memory_space<vmem>>, %arg10: memref<8x128xf32, #tpu.memory_space<vmem>>, %arg11: memref<8x128xf32, #tpu.memory_space<vmem>>) attributes {dimension_semantics = [#tpu.dimension_semantics<parallel>, #tpu.dimension_semantics<arbitrary>], iteration_bounds = array<i64: 2, 2>, scalar_prefetch = 0 : i64, scratch_operands = 2 : i64, tpu.core_type = #tpu.core_type<tc>, window_params = [{transform_indices = @transform_0, window_bounds = array<i64: 8, 128>}, {pipeline_mode = #tpu.pipeline_mode<synchronous>, transform_indices = @transform_1, window_bounds = array<i64: 1, 128>}, {pipeline_mode = #tpu.pipeline_mode<synchronous>, transform_indices = @transform_2, window_bounds = array<i64: 1, 128>}, {transform_indices = @transform_3, window_bounds = array<i64: 128, 128>}, {transform_indices = @transform_4, window_bounds = array<i64: 1, 128>}, {transform_indices = @transform_5, window_bounds = array<i64: 128, 128>}, {pipeline_mode = #tpu.pipeline_mode<synchronous>, transform_indices = @transform_6, window_bounds = array<i64: 1, 128>}, {transform_indices = @transform_7, window_bounds = array<i64: 8, 128>}]} {
    %c0_i32 = arith.constant 0 : i32
    %0 = arith.cmpi eq, %arg1, %c0_i32 : i32
    %1 = arith.extui %0 : i1 to i32
    %c0_i32_0 = arith.constant 0 : i32
    %2 = arith.cmpi ne, %1, %c0_i32_0 : i32
    scf.if %2 {
      %c0_17 = arith.constant 0 : index
      %c0_18 = arith.constant 0 : index
      %25 = vector.load %arg2[%c0_17, %c0_18] : memref<8x128xf32, #tpu.memory_space<vmem>>, vector<8x128xf32>
      %cst_19 = arith.constant dense<0.000000e+00> : vector<8xf32>
      %26 = vector.multi_reduction <add>, %25, %cst_19 [1] : vector<8x128xf32> to vector<8xf32>
      %27 = vector.shape_cast %26 : vector<8xf32> to vector<8x1xf32>
      %cst_20 = arith.constant 1.280000e+02 : f32
      %28 = vector.broadcast %cst_20 : f32 to vector<8x1xf32>
      %29 = arith.divf %27, %28 : vector<8x1xf32>
      %30 = vector.broadcast %29 : vector<8x1xf32> to vector<8x128xf32>
      %31 = arith.subf %25, %30 : vector<8x128xf32>
      %32 = arith.mulf %31, %31 : vector<8x128xf32>
      %cst_21 = arith.constant dense<0.000000e+00> : vector<8xf32>
      %33 = vector.multi_reduction <add>, %32, %cst_21 [1] : vector<8x128xf32> to vector<8xf32>
      %34 = vector.shape_cast %33 : vector<8xf32> to vector<8x1xf32>
      %cst_22 = arith.constant 1.280000e+02 : f32
      %35 = vector.broadcast %cst_22 : f32 to vector<8x1xf32>
      %36 = arith.divf %34, %35 : vector<8x1xf32>
      %cst_23 = arith.constant 9.99999974E-6 : f32
      %37 = vector.broadcast %cst_23 : f32 to vector<8x1xf32>
      %38 = arith.addf %36, %37 : vector<8x1xf32>
      %39 = math.rsqrt %38 : vector<8x1xf32>
      %40 = vector.broadcast %39 : vector<8x1xf32> to vector<8x128xf32>
      %41 = arith.mulf %31, %40 : vector<8x128xf32>
      %c0_24 = arith.constant 0 : index
      %c0_25 = arith.constant 0 : index
      %42 = vector.load %arg3[%c0_24, %c0_25] : memref<1x128xf32, #tpu.memory_space<vmem>>, vector<1x128xf32>
      %43 = vector.broadcast %42 : vector<1x128xf32> to vector<8x128xf32>
      %44 = arith.mulf %41, %43 : vector<8x128xf32>
      %c0_26 = arith.constant 0 : index
      %c0_27 = arith.constant 0 : index
      %45 = vector.load %arg4[%c0_26, %c0_27] : memref<1x128xf32, #tpu.memory_space<vmem>>, vector<1x128xf32>
      %46 = vector.broadcast %45 : vector<1x128xf32> to vector<8x128xf32>
      %47 = arith.addf %44, %46 : vector<8x128xf32>
      %c0_28 = arith.constant 0 : index
      %c0_29 = arith.constant 0 : index
      %48 = vector.load %arg10[%c0_28, %c0_29] : memref<8x128xf32, #tpu.memory_space<vmem>>, vector<8x128xf32>
      tpu.vector_store %arg10[%c0_28, %c0_29], %47 {strides = array<i32>} : memref<8x128xf32, #tpu.memory_space<vmem>>, vector<8x128xf32>,
      %cst_30 = arith.constant 0.000000e+00 : f32
      %49 = vector.broadcast %cst_30 : f32 to vector<8x128xf32>
      %c0_31 = arith.constant 0 : index
      %c0_32 = arith.constant 0 : index
      %50 = vector.load %arg11[%c0_31, %c0_32] : memref<8x128xf32, #tpu.memory_space<vmem>>, vector<8x128xf32>
      tpu.vector_store %arg11[%c0_31, %c0_32], %49 {strides = array<i32>} : memref<8x128xf32, #tpu.memory_space<vmem>>, vector<8x128xf32>,
    } else {
    }
    %c0 = arith.constant 0 : index
    %c0_1 = arith.constant 0 : index
    %3 = vector.load %arg10[%c0, %c0_1] : memref<8x128xf32, #tpu.memory_space<vmem>>, vector<8x128xf32>
    %c0_2 = arith.constant 0 : index
    %c0_3 = arith.constant 0 : index
    %4 = vector.load %arg5[%c0_2, %c0_3] : memref<128x128xf32, #tpu.memory_space<vmem>>, vector<128x128xf32>
    %cst = arith.constant dense<0.000000e+00> : vector<8x128xf32>
    %5 = tpu.matmul %3, %4, %cst {dimension_numbers = #tpu.dot_dimension_numbers<[1], [0], [0], [1], [0, 0, 1, 1], [], []>} : vector<8x128xf32>, vector<128x128xf32>, vector<8x128xf32> -> vector<8x128xf32>
    %c0_4 = arith.constant 0 : index
    %c0_5 = arith.constant 0 : index
    %6 = vector.load %arg6[%c0_4, %c0_5] : memref<1x128xf32, #tpu.memory_space<vmem>>, vector<1x128xf32>
    %7 = vector.broadcast %6 : vector<1x128xf32> to vector<8x128xf32>
    %8 = arith.addf %5, %7 : vector<8x128xf32>
    %cst_6 = arith.constant 5.000000e-01 : f32
    %9 = vector.broadcast %cst_6 : f32 to vector<8x128xf32>
    %10 = arith.mulf %9, %8 : vector<8x128xf32>
    %cst_7 = arith.constant 0.707106769 : f32
    %11 = vector.broadcast %cst_7 : f32 to vector<8x128xf32>
    %12 = arith.mulf %8, %11 : vector<8x128xf32>
    %13 = math.erf %12 : vector<8x128xf32>
    %cst_8 = arith.constant 1.000000e+00 : f32
    %14 = vector.broadcast %cst_8 : f32 to vector<8x128xf32>
    %15 = arith.addf %14, %13 : vector<8x128xf32>
    %16 = arith.mulf %10, %15 : vector<8x128xf32>
    %c0_9 = arith.constant 0 : index
    %c0_10 = arith.constant 0 : index
    %17 = vector.load %arg11[%c0_9, %c0_10] : memref<8x128xf32, #tpu.memory_space<vmem>>, vector<8x128xf32>
    %c0_11 = arith.constant 0 : index
    %c0_12 = arith.constant 0 : index
    %18 = vector.load %arg7[%c0_11, %c0_12] : memref<128x128xf32, #tpu.memory_space<vmem>>, vector<128x128xf32>
    %cst_13 = arith.constant dense<0.000000e+00> : vector<8x128xf32>
    %19 = tpu.matmul %16, %18, %cst_13 {dimension_numbers = #tpu.dot_dimension_numbers<[1], [0], [0], [1], [0, 0, 1, 1], [], []>} : vector<8x128xf32>, vector<128x128xf32>, vector<8x128xf32> -> vector<8x128xf32>
    %20 = arith.addf %17, %19 : vector<8x128xf32>
    %c0_14 = arith.constant 0 : index
    %c0_15 = arith.constant 0 : index
    %21 = vector.load %arg11[%c0_14, %c0_15] : memref<8x128xf32, #tpu.memory_space<vmem>>, vector<8x128xf32>
    tpu.vector_store %arg11[%c0_14, %c0_15], %20 {strides = array<i32>} : memref<8x128xf32, #tpu.memory_space<vmem>>, vector<8x128xf32>,
    %c1_i32 = arith.constant 1 : i32
    %22 = arith.cmpi eq, %arg1, %c1_i32 : i32
    %23 = arith.extui %22 : i1 to i32
    %c0_i32_16 = arith.constant 0 : i32
    %24 = arith.cmpi ne, %23, %c0_i32_16 : i32
    scf.if %24 {
      %c0_17 = arith.constant 0 : index
      %c0_18 = arith.constant 0 : index
      %25 = vector.load %arg11[%c0_17, %c0_18] : memref<8x128xf32, #tpu.memory_space<vmem>>, vector<8x128xf32>
      %c0_19 = arith.constant 0 : index
      %c0_20 = arith.constant 0 : index
      %26 = vector.load %arg8[%c0_19, %c0_20] : memref<1x128xf32, #tpu.memory_space<vmem>>, vector<1x128xf32>
      %27 = vector.broadcast %26 : vector<1x128xf32> to vector<8x128xf32>
      %28 = arith.addf %25, %27 : vector<8x128xf32>
      %c0_21 = arith.constant 0 : index
      %c0_22 = arith.constant 0 : index
      %29 = vector.load %arg2[%c0_21, %c0_22] : memref<8x128xf32, #tpu.memory_space<vmem>>, vector<8x128xf32>
      %30 = arith.addf %28, %29 : vector<8x128xf32>
      %c0_23 = arith.constant 0 : index
      %c0_24 = arith.constant 0 : index
      %31 = vector.load %arg9[%c0_23, %c0_24] : memref<8x128xf32, #tpu.memory_space<vmem>>, vector<8x128xf32>
      tpu.vector_store %arg9[%c0_23, %c0_24], %30 {strides = array<i32>} : memref<8x128xf32, #tpu.memory_space<vmem>>, vector<8x128xf32>,
    } else {
    }
    return
  }
  func.func @transform_0(%arg0: i32, %arg1: i32) -> (i32, i32) {
    %c0_i32 = arith.constant 0 : i32
    %c0_i32_0 = arith.constant 0 : i32
    return %arg0, %c0_i32 : i32, i32
  }
  func.func @transform_1(%arg0: i32, %arg1: i32) -> (i32, i32) {
    %c0_i32 = arith.constant 0 : i32
    %c0_i32_0 = arith.constant 0 : i32
    %c0_i32_1 = arith.constant 0 : i32
    return %c0_i32, %c0_i32_0 : i32, i32
  }
  func.func @transform_2(%arg0: i32, %arg1: i32) -> (i32, i32) {
    %c0_i32 = arith.constant 0 : i32
    %c0_i32_0 = arith.constant 0 : i32
    %c0_i32_1 = arith.constant 0 : i32
    return %c0_i32, %c0_i32_0 : i32, i32
  }
  func.func @transform_3(%arg0: i32, %arg1: i32) -> (i32, i32) {
    %c0_i32 = arith.constant 0 : i32
    %c0_i32_0 = arith.constant 0 : i32
    return %c0_i32, %arg1 : i32, i32
  }
  func.func @transform_4(%arg0: i32, %arg1: i32) -> (i32, i32) {
    %c0_i32 = arith.constant 0 : i32
    %c0_i32_0 = arith.constant 0 : i32
    return %c0_i32, %arg1 : i32, i32
  }
  func.func @transform_5(%arg0: i32, %arg1: i32) -> (i32, i32) {
    %c0_i32 = arith.constant 0 : i32
    %c0_i32_0 = arith.constant 0 : i32
    return %arg1, %c0_i32 : i32, i32
  }
  func.func @transform_6(%arg0: i32, %arg1: i32) -> (i32, i32) {
    %c0_i32 = arith.constant 0 : i32
    %c0_i32_0 = arith.constant 0 : i32
    %c0_i32_1 = arith.constant 0 : i32
    return %c0_i32, %c0_i32_0 : i32, i32
  }
  func.func @transform_7(%arg0: i32, %arg1: i32) -> (i32, i32) {
    %c0_i32 = arith.constant 0 : i32
    %c0_i32_0 = arith.constant 0 : i32
    return %arg0, %c0_i32 : i32, i32
  }
}

</mosaic_0001>

<bundles_post_ra>
// kernel: tpu_custom_call.1
= control target key start
LH: loop header
LB: loop body
LE: loop exit
PB: predicated region body
PF: predicated region fallthrough
CT: control target
= control target key end

     0   :  { %s1539_s0 = inlined_call_operand.hbm [shape: f32[16,128], index: 0, kind: input, shape index: {}]   ;;  %s1540_s1 = inlined_call_operand.hbm [shape: f32[1,128], index: 1, kind: input, shape index: {}]   ;;  %s1541_s2 = inlined_call_operand.vmem [shape: f32[1,128], index: 2, kind: input, shape index: {}]   ;;  %s1542_s3 = inlined_call_operand.hbm [shape: f32[128,256], index: 3, kind: input, shape index: {}]   ;;  %s1543_s4 = inlined_call_operand.vmem [shape: f32[1,256], index: 4, kind: input, shape index: {}]   ;;  %s1544_s5 = inlined_call_operand.hbm [shape: f32[256,128], index: 5, kind: input, shape index: {}]   ;;  %s1545_s6 = inlined_call_operand.vmem [shape: f32[1,128], index: 6, kind: input, shape index: {}]   ;;  %s1546_s7 = inlined_call_operand.hbm [shape: f32[16,128], index: 7, kind: output, shape index: {}]  }
   0x1   :  { %1554 = sst [smem:[#allocation23_spill]] %s1539_s0 }
   0x2   :  { %1555 = sst [smem:[#allocation24_spill]] %s1540_s1 }
   0x3   :  { %1556 = sst [smem:[#allocation25_spill]] %s1542_s3 }
   0x4   :  { %1557 = sst [smem:[#allocation26_spill]] %s1545_s6 }
   0x5   :  { %1558 = sst [smem:[#allocation27_spill]] %s1546_s7 }
   0x6   :  { %12 = vsyncpa [#allocation5], 0 }
   0x7   :  { %14 = vsyncpa [#allocation5 + $0x1], 0 }
   0x8   :  { %15 = vsyncpa [#allocation8], 0 }
   0x9   :  { %16 = vsyncpa [#allocation6], 0 }
   0xa   :  { %18 = vsyncpa [#allocation6 + $0x1], 0  ;;  %s1214_s24 = smov 0   ;;  %s1216_s25 = smov 0  }
   0xb   :  { %s1218_s26 = smov 0   ;;  %s1220_s27 = smov 0  }
   0xc   :  { %s1222_s28 = smov 0   ;;  %s1224_s29 = smov 0  }
   0xd   :  { %s1226_s30 = smov 0   ;;  %s1228_s8 = smov 0  }
   0xe   :  { %s1230_s9 = smov 0   ;;  %s1232_s10 = smov 0  }
   0xf   :  { %s1234_s11 = smov 0  }
  0x10 LB: > { %1559 = sst [smem:[#allocation16_spill]] %s1146_s29  ;;  %s753_s12 = sadd.s32 4294967294, %s1166_s11   ;;  %s1166_s11 = sphi %s1234_s11, %s24_s11   ;;  %s1162_s10 = sphi %s1232_s10, %s1587_s10   ;;  %s1158_s9 = sphi %s1230_s9, %s1595_s9   ;;  %s1154_s8 = sphi %s1228_s8, %s1594_s8   ;;  %s1150_s30 = sphi %s1226_s30, %s1593_s30   ;;  %s1146_s29 = sphi %s1224_s29, %s1584_s29   ;;  %s1142_s28 = sphi %s1222_s28, %s1592_s28   ;;  %s1138_s27 = sphi %s1220_s27, %s1591_s27   ;;  %s1134_s26 = sphi %s1218_s26, %s1590_s26   ;;  %s1130_s25 = sphi %s1216_s25, %s1589_s25   ;;  %s1126_s24 = sphi %s1214_s24, %s1588_s24  }
  0x11   : > { %1560 = sst [smem:[#allocation17_spill]] %s1154_s8  ;;  %s33_s13 = sadd.s32 1, %s1158_s9 }
  0x12   : > { %1561 = sst [smem:[#allocation18_spill]] %s1162_s10  ;;  %p34_p0 = scmp.ge.s32.totalorder %s33_s13, 2 }
  0x13   : > { %s36_s14 = sadd.s32 1, %s1162_s10  ;;  %s43_s15 = sadd.s32 1, %s1146_s29 }
  0x14   : > { %p50_p1 = scmp.ne.s32.totalorder %s1146_s29, %s1142_s28  ;;  %s1597_s13 = smov (%p34_p0, %s33_s13), 0 }
  0x15   : > { %1562 = sst [smem:[#allocation19_spill]] %s1597_s13  ;;  %s1599_s14 = smov (!%p34_p0, %s36_s14), %s1162_s10 }
  0x16   : > { %p51_p2 = scmp.eq.s32.totalorder %s1166_s11, 0  ;;  %p56_p3 = scmp.ne.s32.totalorder %s1142_s28, %s1138_s27 }
  0x17   : > { %p38_p4 = scmp.ge.s32.totalorder %s1599_s14, 2  ;;  %s108_s16 = ssub.s32 %s1158_s9, %s1597_s13 }
  0x18   : > { %p1286_p5 = por %p51_p2, %p50_p1  ;;  %p109_p6 = scmp.eq.s32.totalorder %s108_s16, 0 }
  0x19   : > { %s1601_s14 = smov (%p38_p4, %s1599_s14), 0  ;;  %s111_s18 = sadd.s32 1, %s1134_s26 }
  0x1a   : > { %1564 = sst [smem:[#allocation20_spill]] %s1601_s14  ;;  %p118_p7 = scmp.ne.s32.totalorder %s1134_s26, %s1130_s25 }
  0x1b   : > { %s40_s19 = ssub.s32 %s1162_s10, %s1601_s14  ;;  %p227_p8 = scmp.eq.s32.totalorder %s753_s12, 3 }
  0x1c   : > { %p41_p9 = scmp.eq.s32.totalorder %s40_s19, 0  ;;  %p1297_p10 = por %p118_p7, %p51_p2 }
  0x1d   : > { %s1302_s21 = scalar_select %p109_p6, %s1134_s26, %s111_s18  }
  0x1e   : > { %s1305_s22 = scalar_select %p41_p9, %s1146_s29, %s43_s15  }
  0x1f   : > { %1566 = sst [smem:[#allocation21_spill]] %s1302_s21  ;;  %p1310_p11 = por %p227_p8, %p56_p3 }
  0x20   : > { %1567 = sst [smem:[#allocation22_spill]] %s1305_s22  ;;  %p809_p12 = scmp.lt.s32.totalorder %s1166_s11, 4 }
  0x21   : > { %s265_s12 = sand.u32 1, %s1166_s11   ;;  %s267_s16 = sand.u32 1, %s1146_s29  }
  0x22   : > { %s757_s19 = sshll.u32 %s267_s16, 3  ;;  %s758_s14 = sshll.u32 %s1162_s10, 3 }
  0x23   : > { %s1569_s0 = sld [smem:[#allocation23_spill]]  ;;  %s269_s21 = scalar_lea.vmem [#allocation4], %s757_s19 }
  0x24   : > { %s277_s6 = sshll.u32 %s269_s21, 4  ;;  %p795_p13 = pnand %p809_p12, %p1286_p5  ;;  %s278_s6 = int_to_ptr.vmem [resolvable:$true] %s277_s6 }
  0x25   : > { %p1325_p0 = pnand %p809_p12, %p1297_p10  ;;  %s286_s16 = sand.u32 1, %s1134_s26  }
  0x26   : > { %s760_s10 = sshll.u32 %s1158_s9, 3  ;;  %s1331_s7 = scalar_lea.sflag [#allocation5], %s265_s12 }
  0x27   : > { %s1571_s3 = sld [smem:[#allocation25_spill]]  ;;  %s1168_s19 = smov 256  }
  0x28   : > { %p124_p2 = scmp.ne.s32.totalorder %s1130_s25, %s1126_s24  ;;  %p754_p6 = scmp.ge.s32.totalorder %s1166_s11, 1 }
  0x29   : > { %s273_s8 = scalar_lea.hbm %s1569_s0, %s758_s14  ;;  %p234_p7 = scmp.lt.s32.totalorder %s1166_s11, 5 }
  0x2a   : > { %s275_s18 = sshll.u32 %s273_s8, 4  ;;  %s1334_s8 = sshll.u32 %s286_s16, 7  ;;  %s276_s18 = int_to_ptr.hbm [resolvable:$true] %s275_s18 }
  0x2b   : > { %797 = dma.hbm_to_vmem [thread:$0]  (!%p795_p13), %s276_s18, 128, %s278_s6, %s1331_s7  }
  0x2c   : > { %s288_s21 = scalar_lea.vmem [#allocation9], %s1334_s8  ;;  %s1551_s6 = smov 128  }
  0x2d   : > { %s292_s17 = scalar_lea.hbm %s1571_s3, %s760_s10  ;;  %s295_s12 = sshll.u32 %s288_s21, 4  ;;  %s296_s12 = int_to_ptr.vmem [resolvable:$true] %s295_s12 }
  0x2e   : > { %s293_s20 = sshll.u32 %s292_s17, 4  ;;  %s1552_s18 = smov 8   ;;  %s294_s20 = int_to_ptr.hbm [resolvable:$true] %s293_s20 }
  0x2f   : > { %800 = dma.hbm_to_vmem [thread:$0]  (!%p1325_p0), %s294_s20, 2048, %s296_s12, %s1331_s7, %s1168_s19, %s1551_s6, %s1552_s18  }
  0x30   : > { %s1346_s16 = sadd.s32 4294967295, %s1166_s11   ;;  %p1376_p12 = pnand %p754_p6, %p234_p7 }
  0x31   : > { %p57_p4 = scmp.eq.s32.totalorder %s1346_s16, 0  ;;  %p221_p5 = scmp.eq.s32.totalorder %s1346_s16, 3 }
  0x32   : > { %s1576_s1 = sld [smem:[#allocation24_spill]]  ;;  %s1171_s12 = smov [#allocation7]  }
  0x33   : > { %p1359_p8 = por %p57_p4, %p56_p3  ;;  %p1365_p9 = por %p124_p2, %p57_p4 }
  0x34   : > { %p1372_p10 = por %p221_p5, %p50_p1  ;;  %p790_p3 = pneg %p1376_p12 }
  0x35   : > { %s248_s19 = sshll.u32 %s1171_s12, 4  ;;  %s777_s6 = sshll.u32 %s1158_s9, 7  ;;  %s249_s19 = int_to_ptr.vmem [resolvable:$true] %s248_s19 }
  0x36   : > { %p791_p1 = pnand %p790_p3, %p57_p4  ;;  %s320_s3 = scalar_lea.hbm %s1544_s5, %s777_s6 }
  0x37   : > { %s321_s22 = sshll.u32 %s320_s3, 4  ;;  %s315_s17 = scalar_lea.vmem [#allocation10], %s1334_s8  ;;  %s322_s22 = int_to_ptr.hbm [resolvable:$true] %s321_s22 }
  0x38   : > { %s246_s21 = sshll.u32 %s1576_s1, 4  ;;  %s323_s20 = sshll.u32 %s315_s17, 4  ;;  %s247_s21 = int_to_ptr.hbm [resolvable:$true] %s246_s21  ;;  %s324_s20 = int_to_ptr.vmem [resolvable:$true] %s323_s20 }
  0x39   : > { %793 = dma.hbm_to_vmem [thread:$0]  (!%p791_p1), %s247_s21, 16, %s249_s19, [#allocation8]  }
  0x3a   : > { %s1577_s1 = smov 8   ;;  %s1578_s29 = smov 128  }
  0x3b   : > { %803 = dma.hbm_to_vmem [thread:$0]  (!%p1325_p0), %s322_s22, 2048, %s324_s20, %s1331_s7, %s1578_s29, %s1578_s29, %s1577_s1  }
  0x3c   : > { %335 = sbr.rel (%p1376_p12) target bundleno = 721 (0x2d1), region = 48  ;;  %s337_s0 = sand.u32 (!%p1376_p12), 1, %s1346_s16  }
  0x3d   : > { %s339_s6 = sand.u32 (!%p1376_p12), 1, %s1142_s28   ;;  %s338_s8 = scalar_lea.sflag (!%p1376_p12), [#allocation5], %s337_s0 }
  0x3e   : > { %s1404_s3 = sshll.u32 (!%p1376_p12), %s339_s6, 3 }
  0x3f   : > { %s341_s18 = scalar_lea.vmem (!%p1376_p12), [#allocation4], %s1404_s3 }
  0x41   : > { %1109 = dma.done.wait (%p1359_p8), %s338_s8, 128  }
  0x42   : > { %1111 = vsyncadd (%p1359_p8), %s338_s8, 4294967168 }
  0x43   : > { %1113 = dma.done.wait (%p57_p4), [#allocation8], 16  }
  0x44   : > { %1115 = vsyncadd (%p57_p4), [#allocation8], 4294967280  ;;  %s354_s1 = sand.u32 1, %s1130_s25  }
  0x45   : > { %s767_s29 = sshll.u32 %s354_s1, 7 }
  0x46   : > { %s1416_s22 = scalar_lea.vmem [#allocation9], %s767_s29 }
  0x47   : > { %1117 = dma.done.wait (%p1365_p9), %s338_s8, 4096  }
  0x48   : > { %1119 = vsyncadd (%p1365_p9), %s338_s8, 4294963200  ;;  %p411_p13 = scmp.lt.s32.totalorder %s1150_s30, 1  ;;  %s1430_s14 = scalar_lea.vmem [#allocation10], %s767_s29 }
  0x49   : > { %s410_s21 = scalar_lea.vmem [#allocation11], %s1404_s3  ;;  %p770_p0 = scmp.ne.s32.totalorder %s1150_s30, 0 }
  0x4a   : > { %s1424_s15 = scalar_select %p411_p13, %s1150_s30, 1 }
  0x4b   : > { %418 = sbr.rel (%p770_p0) target bundleno = 348 (0x15c), region = 68 }
  0x4c   : > { %s413_s10 = scalar_lea.vmem %s1543_s4, %s1424_s15 }
  0x50   : > { %v419_v0 = vld [vmem:[%s341_s18] sm:$0xff]  ;;  %v1172_v1 = vmov 128.0   ;;  %v1173_v12 = vmov 0.0   ;;  %v906_v22 = vld [vmem:[#allocation7] ss:$0 sm:$0xff] }
  0x51   : > { %420 = vadd.xlane.f32.xlu0 %v419_v0  ;;  %908 = vrcp.f32 %v1172_v1  ;;  %458 = vst [vmem:[#allocation3] sm:$0xff] %v1173_v12  ;;  %v907_v24 = vld [vmem:[%s1541_s2] ss:$0 sm:$0xff] }
  0x57   : > { %v909_v2 = vpop.eup %908 }
  0x58   : > { %v423_v3 = vmul.f32 128.0, %v909_v2  ;;  %vm427_vm0 = vweird.f32 %v909_v2 }
  0x5a   : > { %v424_v4 = vsub.f32 1.0, %v423_v3 }
  0x5c   : > { %v425_v5 = vmul.f32 %v909_v2, %v424_v4 }
  0x5e   : > { %v426_v6 = vadd.f32 %v909_v2, %v425_v5 }
  0x60   : > { %v428_v7 = vsel %vm427_vm0, %v909_v2, %v426_v6 }
  0xc4   : > { %v421_v8 = vpop.xlane.xlu0 %420 }
  0xc5   : > { %v429_v9 = vmul.f32 %v428_v7, %v421_v8 }
  0xc7   : > { %v430_v10 = vsub.f32 %v419_v0, %v429_v9 }
  0xc9   : > { %v431_v11 = vmul.f32 %v430_v10, %v430_v10 }
  0xcb   : > { %432 = vadd.xlane.f32.xlu0 %v431_v11 }
 0x13e   : > { %v433_v13 = vpop.xlane.xlu0 %432 }
 0x13f   : > { %v434_v14 = vmul.f32 %v433_v13, %v428_v7 }
 0x141   : > { %v435_v15 = vadd.f32 1e-05, %v434_v14 }
 0x143   : > { %910 = vrsqrt.f32 %v435_v15  ;;  %vm442_vm2 = vweird.f32 %v435_v15 }
 0x149   : > { %v911_v16 = vpop.eup %910 }
 0x14a   : > { %v437_v17 = vmul.f32 %v911_v16, %v435_v15  ;;  %vm443_vm1 = vweird.f32 %v911_v16 }
 0x14b   : > { %vm444_vm3 = vmor %vm442_vm2, %vm443_vm1 }
 0x14c   : > { %v438_v18 = vmul.f32 %v911_v16, %v437_v17 }
 0x14e   : > { %v439_v19 = vmul.f32 0.5, %v438_v18 }
 0x150   : > { %v440_v20 = vsub.f32 1.5, %v439_v19 }
 0x152   : > { %v441_v21 = vmul.f32 %v911_v16, %v440_v20 }
 0x154   : > { %v445_v23 = vsel %vm444_vm3, %v911_v16, %v441_v21 }
 0x155   : > { %v446_v25 = vmul.f32 %v445_v23, %v430_v10 }
 0x157   : > { %v451_v26 = vmul.f32 %v906_v22, %v446_v25 }
 0x159   : > { %v456_v27 = vadd.f32 %v907_v24, %v451_v26 }
 0x15b   : > { %457 = vst [vmem:[#allocation2] sm:$0xff] %v456_v27 }
 0x15c PF: > { %v475_v28 = vld [vmem:[%s1416_s22 + $0x78] sm:$0xff]  ;;  %v474_v29 = vld [vmem:[%s1416_s22 + $0x70] sm:$0xff]  ;;  %v473_v30 = vld [vmem:[%s1416_s22 + $0x68] sm:$0xff]  ;;  %p772_p2 = scmp.ne.s32.totalorder %s1150_s30, 1 }
 0x15d   : > { %480 = vmatpush.msra.mxu0 %v475_v28  ;;  %v472_v31 = vld [vmem:[%s1416_s22 + $0x60] sm:$0xff]  ;;  %v471_v32 = vld [vmem:[%s1416_s22 + $0x58] sm:$0xff]  ;;  %v470_v33 = vld [vmem:[%s1416_s22 + $0x50] sm:$0xff]  ;;  %s1579_s8 = sld [smem:[#allocation26_spill]] (!%p772_p2) }
 0x15e   : > { %v469_v34 = vld [vmem:[%s1416_s22 + $0x48] sm:$0xff]  ;;  %v468_v35 = vld [vmem:[%s1416_s22 + $0x40] sm:$0xff]  ;;  %v467_v36 = vld [vmem:[%s1416_s22 + $0x38] sm:$0xff] }
 0x15f   : > { %481 = vmatpush.msra.mxu0 %v474_v29  ;;  %v466_v37 = vld [vmem:[%s1416_s22 + $0x30] sm:$0xff]  ;;  %v465_v38 = vld [vmem:[%s1416_s22 + $0x28] sm:$0xff]  ;;  %v464_v39 = vld [vmem:[%s1416_s22 + $0x20] sm:$0xff] }
 0x160   : > { %v463_v40 = vld [vmem:[%s1416_s22 + $0x18] sm:$0xff]  ;;  %v462_v41 = vld [vmem:[%s1416_s22 + $0x10] sm:$0xff]  ;;  %v461_v42 = vld [vmem:[%s1416_s22 + $0x8] sm:$0xff] }
 0x161   : > { %482 = vmatpush.msra.mxu0 %v473_v30  ;;  %v460_v43 = vld [vmem:[%s1416_s22] sm:$0xff]  ;;  %v560_v45 = vld [vmem:[%s1430_s14 + $0x78] sm:$0xff]  ;;  %v559_v46 = vld [vmem:[%s1430_s14 + $0x70] sm:$0xff] }
 0x162   : > { %v459_v44 = vld [vmem:[#allocation2] sm:$0xff]  ;;  %561 = vmatpush.msra.mxu1 %v560_v45  ;;  %v558_v47 = vld [vmem:[%s1430_s14 + $0x68] sm:$0xff]  ;;  %v555_v51 = vld [vmem:[%s1430_s14 + $0x50] sm:$0xff] }
 0x163   : > { %483 = vmatpush.msra.mxu0 %v472_v31  ;;  %v557_v48 = vld [vmem:[%s1430_s14 + $0x60] sm:$0xff]  ;;  %v912_v49 = vld [vmem:[%s413_s10] ss:$0 sm:$0xff]  ;;  %v554_v53 = vld [vmem:[%s1430_s14 + $0x48] sm:$0xff] }
 0x164   : > { %562 = vmatpush.msra.mxu1 %v559_v46  ;;  %v556_v50 = vld [vmem:[%s1430_s14 + $0x58] sm:$0xff]  ;;  %v553_v55 = vld [vmem:[%s1430_s14 + $0x40] sm:$0xff]  ;;  %v551_v59 = vld [vmem:[%s1430_s14 + $0x30] sm:$0xff] }
 0x165   : > { %484 = vmatpush.msra.mxu0 %v471_v32  ;;  %v552_v57 = vld [vmem:[%s1430_s14 + $0x38] sm:$0xff]  ;;  %v550_v61 = vld [vmem:[%s1430_s14 + $0x28] sm:$0xff]  ;;  %v549_v0 = vld [vmem:[%s1430_s14 + $0x20] sm:$0xff] }
 0x166   : > { %563 = vmatpush.msra.mxu1 %v558_v47  ;;  %v548_v3 = vld [vmem:[%s1430_s14 + $0x18] sm:$0xff]  ;;  %v547_v6 = vld [vmem:[%s1430_s14 + $0x10] sm:$0xff]  ;;  %v546_v9 = vld [vmem:[%s1430_s14 + $0x8] sm:$0xff] }
 0x167   : > { %485 = vmatpush.msra.mxu0 %v470_v33  ;;  %v545_v11 = vld [vmem:[%s1430_s14] sm:$0xff] }
 0x168   : > { %564 = vmatpush.msra.mxu1 %v557_v48 }
 0x169   : > { %486 = vmatpush.msra.mxu0 %v469_v34 }
 0x16a   : > { %565 = vmatpush.msra.mxu1 %v556_v50 }
 0x16b   : > { %487 = vmatpush.msra.mxu0 %v468_v35 }
 0x16c   : > { %566 = vmatpush.msra.mxu1 %v555_v51 }
 0x16d   : > { %488 = vmatpush.msra.mxu0 %v467_v36 }
 0x16e   : > { %567 = vmatpush.msra.mxu1 %v554_v53 }
 0x16f   : > { %489 = vmatpush.msra.mxu0 %v466_v37 }
 0x170   : > { %568 = vmatpush.msra.mxu1 %v553_v55 }
 0x171   : > { %490 = vmatpush.msra.mxu0 %v465_v38 }
 0x172   : > { %569 = vmatpush.msra.mxu1 %v552_v57 }
 0x173   : > { %491 = vmatpush.msra.mxu0 %v464_v39  ;;  %v544_v39 = vld [vmem:[#allocation3] sm:$0xff] }
 0x174   : > { %570 = vmatpush.msra.mxu1 %v551_v59 }
 0x175   : > { %492 = vmatpush.msra.mxu0 %v463_v40 }
 0x176   : > { %571 = vmatpush.msra.mxu1 %v550_v61 }
 0x177   : > { %493 = vmatpush.msra.mxu0 %v462_v41 }
 0x178   : > { %572 = vmatpush.msra.mxu1 %v549_v0 }
 0x179   : > { %494 = vmatpush.msra.mxu0 %v461_v42 }
 0x17a   : > { %573 = vmatpush.msra.mxu1 %v548_v3 }
 0x17b   : > { %495 = vmatpush.msra.mxu0 %v460_v43 }
 0x17c   : > { %496 = vmatmul.f32.vlgmr.msra.gmra.mxu0 %v459_v44  ;;  %574 = vmatpush.msra.mxu1 %v547_v6 }
 0x17e   : > { %575 = vmatpush.msra.mxu1 %v546_v9 }
 0x180   : > { %576 = vmatpush.msra.mxu1 %v545_v11 }
 0x1f9   : > { %v497_v52 = vpop.f32.mrf.mxu0 }
 0x1fa   : > { %v498_v54 = vadd.f32 %v912_v49, %v497_v52 }
 0x1fc   : > { %v501_v56 = vmul.f32 0.70710677, %v498_v54  ;;  %v500_v36 = vmul.f32 0.5, %v498_v54 }
 0x1fe   : > { %v502_v58 = vmul.f32 %v501_v56, %v501_v56 }
 0x200   : > { %v503_v60 = vmin.f32 %v502_v58, 16.0 }
 0x202   : > { %v504_v62 = vmul.f32 2.1237322e-06, %v503_v60  ;;  %v515_v63 = vmul.f32 3.8918573e-05, %v503_v60 }
 0x204   : > { %v505_v1 = vadd.f32 0.00028619796, %v504_v62  ;;  %v516_v2 = vadd.f32 0.001143296, %v515_v63 }
 0x206   : > { %v506_v4 = vmul.f32 %v505_v1, %v503_v60  ;;  %v517_v5 = vmul.f32 %v516_v2, %v503_v60 }
 0x208   : > { %v518_v7 = vadd.f32 0.014752088, %v517_v5  ;;  %v507_v8 = vadd.f32 0.0036580483, %v506_v4 }
 0x20a   : > { %v519_v10 = vmul.f32 %v518_v7, %v503_v60  ;;  %v508_v13 = vmul.f32 %v507_v8, %v503_v60 }
 0x20c   : > { %v520_v12 = vadd.f32 0.112945676, %v519_v10  ;;  %v509_v16 = vadd.f32 0.05243302, %v508_v13 }
 0x20e   : > { %v521_v14 = vmul.f32 %v520_v12, %v503_v60  ;;  %v510_v19 = vmul.f32 %v509_v16, %v503_v60 }
 0x210   : > { %v522_v15 = vadd.f32 0.4994258, %v521_v14  ;;  %v511_v20 = vadd.f32 0.18741608, %v510_v19 }
 0x212   : > { %v523_v17 = vmul.f32 %v522_v15, %v503_v60  ;;  %v512_v22 = vmul.f32 %v511_v20, %v503_v60 }
 0x214   : > { %v524_v18 = vadd.f32 1.0, %v523_v17  ;;  %v513_v26 = vadd.f32 1.1283791, %v512_v22 }
 0x216   : > { %913 = vrcp.f32 %v524_v18  ;;  %v536_v25 = vand.u32 2147483648, %v524_v18  ;;  %v534_v28 = vand.u32 2147483647, %v524_v18  ;;  %vm530_vm5 = vweird.f32 %v524_v18 }
 0x217   : > { %v514_v31 = vmul.f32 %v513_v26, %v501_v56 }
 0x218   : > { %v537_v30 = vor.u32 1.1754944e-38, %v536_v25  ;;  %vm535_vm7 = vcmp.eq.f32.partialorder %v534_v28, 8.507059e+37 }
 0x21c   : > { %v914_v21 = vpop.eup %913 }
 0x21d   : > { %v526_v23 = vmul.f32 %v914_v21, %v524_v18  ;;  %vm531_vm4 = vweird.f32 %v914_v21 }
 0x21e   : > { %vm532_vm6 = vmor %vm530_vm5, %vm531_vm4 }
 0x21f   : > { %v527_v24 = vsub.f32 1.0, %v526_v23 }
 0x221   : > { %v528_v27 = vmul.f32 %v914_v21, %v527_v24 }
 0x223   : > { %v529_v29 = vadd.f32 %v914_v21, %v528_v27 }
 0x225   : > { %v533_v32 = vsel %vm532_vm6, %v914_v21, %v529_v29 }
 0x226   : > { %v538_v33 = vsel %vm535_vm7, %v537_v30, %v533_v32 }
 0x227   : > { %v539_v34 = vmul.f32 %v538_v33, %v514_v31 }
 0x229   : > { %v771_v35 = vclamps-f32 %v539_v34, 1.0 }
 0x22b   : > { %v542_v37 = vadd.f32 1.0, %v771_v35 }
 0x22d   : > { %v543_v38 = vmul.f32 %v542_v37, %v500_v36 }
 0x22f   : > { %577 = vmatmul.f32.vlgmr.msra.gmra.mxu1 %v543_v38 }
 0x2ab   : > { %586 = sbr.rel (%p772_p2) target bundleno = 700 (0x2bc), region = 72 }
 0x2ac   : > { %v578_v40 = vpop.f32.mrf.mxu1 }
 0x2ad   : > { %v581_v41 = vadd.f32 %v578_v40, %v544_v39 }
 0x2af   : > { %582 = vst [vmem:[#allocation3] sm:$0xff] %v581_v41 }
 0x2b0   : > { %v915_v43 = vld [vmem:[%s1579_s8] ss:$0 sm:$0xff]  ;;  %v593_v44 = vld [vmem:[%s341_s18] sm:$0xff] }
 0x2b6   : > { %v587_v42 = vld [vmem:[#allocation3] sm:$0xff] }
 0x2b7   : > { %v592_v45 = vadd.f32 %v915_v43, %v587_v42 }
 0x2b9   : > { %v594_v46 = vadd.f32 %v593_v44, %v592_v45 }
 0x2bb   : > { %595 = vst [vmem:[%s410_s21] sm:$0xff] %v594_v46 }
 0x2bc PF: > { %s1580_s1 = sld [smem:[#allocation17_spill]]  ;;  %s609_s16 = sshll.u32 %s410_s21, 4  ;;  %s610_s16 = int_to_ptr.vmem [resolvable:$true] %s609_s16 }
 0x2bd   : > { %s1581_s15 = sld [smem:[#allocation27_spill]]  ;;  %s597_s18 = scalar_lea.sflag [#allocation6], %s339_s6 }
 0x2c2   : > { %s774_s30 = sshll.u32 %s1580_s1, 3 }
 0x2c3   : > { %s607_s7 = scalar_lea.hbm %s1581_s15, %s774_s30  ;;  %s1056_s17 = scalar_lea.hbm %s1581_s15, 16 }
 0x2c4   : > { %s611_s10 = sshll.u32 %s607_s7, 4  ;;  %s612_s10 = int_to_ptr.hbm [resolvable:$true] %s611_s10 }
 0x2c5   : > { %s1050_s14 = sshra.s32 %s612_s10, 4  ;;  %s1051_s14 = int_to_ptr.hbm [resolvable:$true] %s1050_s14 }
 0x2c6   : > { %s1052_s13 = scalar_lea.hbm %s1051_s14, 8  ;;  %p1057_p7 = scmp.lt.s32.totalorder %s1051_s14, %s1581_s15 }
 0x2c7   : > { %p1053_p4 = scmp.ne.s32.totalorder %s1051_s14, %s1052_s13  ;;  %p1058_p8 = scmp.lt.s32.totalorder %s1056_s17, %s1052_s13 }
 0x2c9   : > { %p1054_p5 = pnand %p1053_p4, %p1372_p10  ;;  %p1059_p9 = por %p1058_p8, %p1057_p7 }
 0x2cb   : > { %p1055_p6 = pneg %p1054_p5 }
 0x2cd   : > { %p1060_p12 = pnand %p1059_p9, %p1055_p6 }
 0x2cf   : > { %1063 = shalt.err (!%p1060_p12)
}
 0x2d0   : > { %788 = dma.vmem_to_hbm [thread:$0]  (%p1372_p10), %s610_s16, 128, %s612_s10, %s597_s18  }
 0x2d1 PF: > { %p811_p3 = scmp.ge.s32.totalorder %s1166_s11, 2  ;;  %s623_s6 = sand.u32 1, %s1138_s27  }
 0x2d2   : > { %s624_s3 = scalar_lea.sflag [#allocation6], %s623_s6 }
 0x2d3   : > { %p805_p1 = pnand %p811_p3, %p1310_p11 }
 0x2d5   : > { %p806_p13 = pneg %p805_p1 }
 0x2d7   : > { %1121 = dma.done.wait (%p806_p13), %s624_s3, 128  }
 0x2d8   : > { %1123 = vsyncadd (%p806_p13), %s624_s3, 4294967168  ;;  %s24_s11 = sadd.s32 1, %s1166_s11   ;;  %s1582_s21 = sld [smem:[#allocation21_spill]] }
 0x2d9   : > { %p21_p0 = scmp.ge.s32.totalorder %s24_s11, 6   ;;  %s1583_s8 = sld [smem:[#allocation16_spill]] }
 0x2da   : > { %s1584_s29 = sld [smem:[#allocation22_spill]]  ;;  %s1588_s24 = smov %s1130_s25 }
 0x2db   : > { %s1585_s1 = sld [smem:[#allocation18_spill]]  ;;  %s1589_s25 = smov %s1134_s26 }
 0x2dc   : > { %s1586_s22 = sld [smem:[#allocation19_spill]]  ;;  %s1591_s27 = smov %s1142_s28 }
 0x2dd   : > { %s1587_s10 = sld [smem:[#allocation20_spill]]  ;;  %s1593_s30 = smov %s1158_s9 }
 0x2de   : > { %s1590_s26 = smov %s1582_s21  ;;  %23 = sbr.rel (!%p21_p0) target bundleno = 16 (0x10), region = 130 }
 0x2df   : > { %s1592_s28 = smov %s1583_s8 }
 0x2e1   : > { %s1594_s8 = smov %s1585_s1 }
 0x2e2   : > { %s1595_s9 = smov %s1586_s22 }
 0x2e3   :  { %630 = vsyncpa [#allocation5], 1 }
 0x2e4   :  { %632 = vsyncpa [#allocation5 + $0x1], 1 }
 0x2e5   :  { %633 = vsyncpa [#allocation8], 1 }
 0x2e6   :  { %634 = vsyncpa [#allocation6], 1 }
 0x2e7   :  { %636 = vsyncpa [#allocation6 + $0x1], 1 }

</bundles_post_ra>
